<compile_context>
chip_gen: v7x
topology: tpu7x:2x2x1
jax: 0.10.0
libtpu: 0.0.40
codegen_flags: <defaults>
</compile_context>

<pallas_src>
import jax
import jax.numpy as jnp
from jax.experimental import pallas as pl
from jax.experimental.pallas import tpu as pltpu

LANE = 128  # lane width of a vreg


def _cdiv(a, b):
    return -(-a // b)


def _round_up(n, m):
    return _cdiv(n, m) * m


def actor_kernel(x_ref, w1_ref, b1_ref, w2_ref, b2_ref, w3_ref, b3_ref, o_ref):
    xt = x_ref[...]                                               # (1, TB), batch on lanes

    # fc1 (in_features = 1): outer-product broadcast on the VPU.
    h1 = jnp.maximum(w1_ref[...] * xt + b1_ref[...], 0.0)        # (64, TB) f32

    # fc2: the one real matmul -> MXU, f32 accumulation. (h1 cast is a no-op for f32
    # weights; becomes a bf16 downcast when use_bf16=True in the wrapper.)
    h2 = jnp.dot(w2_ref[...], h1.astype(w2_ref.dtype),
                 preferred_element_type=jnp.float32)
    h2 = jnp.maximum(h2 + b2_ref[...], 0.0)                      # (64, TB) f32

    # head (out_features = 1): multiply + sublane reduce; scalar bias from SMEM.
    o = jnp.sum(w3_ref[...] * h2, axis=0, keepdims=True) + b3_ref[0]
    o_ref[...] = o.astype(o_ref.dtype)                           # lane-dense (1, TB)


def actor_forward(x, params, *, tb=8192, use_bf16=False):
    """x: (B, 1) float32; params in PyTorch layout (w: [out, in], b: [out]).

    tb: max batch-tile width (lanes). Primary perf knob; default 8192 keeps
        per-step intermediates (~4.5 MiB) well under every chip's scoped VMEM.
    """
    w1, b1, w2, b2, w3, b3 = params
    B = x.shape[0]
    H = w2.shape[0]                                    # hidden width (64)

    # Batch onto the lane axis; (B, 1) -> (1, B) preserves data order.
    xT = x.reshape(1, B).astype(jnp.float32)

    # ---- Tile / grid selection -------------------------------------------------
    tb_cap = max(LANE, _round_up(tb, LANE))
    B_aligned = _round_up(B, LANE)                     # at least one full 128-lane block

    if B_aligned <= LANE:
        # Tiny batch: single full 128-lane block (launch-overhead bound anyway).
        TB, B_pad = LANE, LANE
    else:
        # Even number (>=2) of grid steps so v7x's two TensorCores both get work
        # (negligible cost on v5e/v6e); tile width capped for the VMEM budget.
        n_steps = 2
        while _round_up(_cdiv(B_aligned, n_steps), LANE) > tb_cap:
            n_steps += 2
        TB = _round_up(_cdiv(B_aligned, n_steps), LANE)
        B_pad = n_steps * TB

    if B_pad != B:
        xT = jnp.pad(xT, ((0, 0), (0, B_pad - B)))     # zero-pad unused lanes

    # ---- Kernel-friendly parameter layouts (pure reshapes) ----------------------
    w1c = w1.reshape(H, 1).astype(jnp.float32)         # fc1 weight column ([out, in=1])
    b1c = b1.reshape(H, 1).astype(jnp.float32)
    w2m = w2.astype(jnp.bfloat16 if use_bf16 else jnp.float32)   # [out, in] = w @ h layout
    b2c = b2.reshape(H, 1).astype(jnp.float32)
    w3c = w3.reshape(H, 1).astype(jnp.float32)         # head weight column for sublane reduce
    b3s = b3.reshape(1).astype(jnp.float32)            # scalar head bias -> SMEM

    def resident(shape):        # full-array block, constant index map -> stays in VMEM
        return pl.BlockSpec(shape, lambda i: (0, 0))

    outT = pl.pallas_call(
        actor_kernel,
        out_shape=jax.ShapeDtypeStruct((1, B_pad), jnp.float32),
        grid=(B_pad // TB,),
        in_specs=[
            pl.BlockSpec((1, TB), lambda i: (0, i)),                 # x tile, batch on lanes
            resident((H, 1)), resident((H, 1)),                      # fc1 w, b
            resident((H, H)), resident((H, 1)),                      # fc2 w, b
            resident((H, 1)),                                        # head w
            pl.BlockSpec(memory_space=pltpu.MemorySpace.SMEM),       # head bias (scalar)
        ],
        out_specs=pl.BlockSpec((1, TB), lambda i: (0, i)),
        compiler_params=pltpu.CompilerParams(
            dimension_semantics=("parallel",),          # shard batch across TCs (v7x)
            vmem_limit_bytes=32 * 1024 * 1024,          # portable headroom for large TB
        ),
    )(xT, w1c, b1c, w2m, b2c, w3c, b3s)

    # Drop batch padding; (1, B) -> (B, 1) is a pure reshape.
    return outT[:, :B].reshape(B, 1)


def init_params(key):
    """PyTorch-layout params with nn.Linear-style uniform(-1/sqrt(fan_in), +)."""
    def linear(k, fan_in, fan_out):
        kw, kb = jax.random.split(k)
        bound = 1.0 / jnp.sqrt(jnp.float32(fan_in))
        w = jax.random.uniform(kw, (fan_out, fan_in), jnp.float32, -bound, bound)
        b = jax.random.uniform(kb, (fan_out,), jnp.float32, -bound, bound)
        return w, b

    k1, k2, k3 = jax.random.split(key, 3)
    w1, b1 = linear(k1, 1, 64)
    w2, b2 = linear(k2, 64, 64)
    w3, b3 = linear(k3, 64, 1)
    return (w1, b1, w2, b2, w3, b3)


def actor_reference(x, params):
    """Pure-JAX reference (PyTorch semantics: x @ W.T + b)."""
    w1, b1, w2, b2, w3, b3 = params
    h1 = jnp.maximum(x @ w1.T + b1, 0.0)
    h2 = jnp.maximum(h1 @ w2.T + b2, 0.0)
    return h2 @ w3.T + b3


if __name__ == "__main__":
    key = jax.random.PRNGKey(0)
    pkey, xkey1, xkey2 = jax.random.split(key, 3)
    params = init_params(pkey)

    # Small batch (module-usage size): single 128-lane block.
    x_small = jax.random.normal(xkey1, (8, 1), jnp.float32)
    out_small = jax.block_until_ready(actor_forward(x_small, params))
    ref_small = actor_reference(x_small, params)
    assert out_small.shape == (8, 1)
    assert jnp.allclose(out_small, ref_small, atol=1e-4, rtol=1e-4), \
        "Pallas output mismatch vs reference (small batch)"

    # Non-multiple-of-tile batch with default tile cap: exercises the 2-step grid.
    x_big = jax.random.normal(xkey2, (1000, 1), jnp.float32)
    out_big = jax.block_until_ready(actor_forward(x_big, params))
    ref_big = actor_reference(x_big, params)
    assert out_big.shape == (1000, 1)
    assert jnp.allclose(out_big, ref_big, atol=1e-4, rtol=1e-4), \
        "Pallas output mismatch vs reference (2-step grid)"

    # Same batch with a small tile cap: exercises the capped, >2-step (even) grid.
    out_big4 = jax.block_until_ready(actor_forward(x_big, params, tb=256))
    assert jnp.allclose(out_big4, ref_big, atol=1e-4, rtol=1e-4), \
        "Pallas output mismatch vs reference (capped tile grid)"

    print("KERNEL_OK")
</pallas_src>

<mosaic_0001>
module attributes {stable_mosaic.version = 11 : i64} {
  func.func @actor_kernel(%arg0: i32, %arg1: memref<1x128xf32, #tpu.memory_space<vmem>>, %arg2: memref<64x1xf32, #tpu.memory_space<vmem>>, %arg3: memref<64x1xf32, #tpu.memory_space<vmem>>, %arg4: memref<64x64xf32, #tpu.memory_space<vmem>>, %arg5: memref<64x1xf32, #tpu.memory_space<vmem>>, %arg6: memref<64x1xf32, #tpu.memory_space<vmem>>, %arg7: memref<1xf32, #tpu.memory_space<smem>>, %arg8: memref<1x128xf32, #tpu.memory_space<vmem>>) attributes {dimension_semantics = [#tpu.dimension_semantics<parallel>], iteration_bounds = array<i64: 1>, scalar_prefetch = 0 : i64, scratch_operands = 0 : i64, tpu.core_type = #tpu.core_type<tc>, window_params = [{transform_indices = @transform_0, window_bounds = array<i64: 1, 128>}, {pipeline_mode = #tpu.pipeline_mode<synchronous>, transform_indices = @transform_1, window_bounds = array<i64: 64, 1>}, {pipeline_mode = #tpu.pipeline_mode<synchronous>, transform_indices = @transform_2, window_bounds = array<i64: 64, 1>}, {pipeline_mode = #tpu.pipeline_mode<synchronous>, transform_indices = @transform_3, window_bounds = array<i64: 64, 64>}, {pipeline_mode = #tpu.pipeline_mode<synchronous>, transform_indices = @transform_4, window_bounds = array<i64: 64, 1>}, {pipeline_mode = #tpu.pipeline_mode<synchronous>, transform_indices = @transform_5, window_bounds = array<i64: 64, 1>}, {transform_indices = @transform_6, window_bounds = array<i64: 1>}, {transform_indices = @transform_7, window_bounds = array<i64: 1, 128>}]} {
    %c0 = arith.constant 0 : index
    %c0_0 = arith.constant 0 : index
    %0 = vector.load %arg1[%c0, %c0_0] : memref<1x128xf32, #tpu.memory_space<vmem>>, vector<1x128xf32>
    %c0_1 = arith.constant 0 : index
    %c0_2 = arith.constant 0 : index
    %1 = vector.load %arg2[%c0_1, %c0_2] : memref<64x1xf32, #tpu.memory_space<vmem>>, vector<64x1xf32>
    %2 = vector.broadcast %1 : vector<64x1xf32> to vector<64x128xf32>
    %3 = vector.broadcast %0 : vector<1x128xf32> to vector<64x128xf32>
    %4 = arith.mulf %2, %3 : vector<64x128xf32>
    %c0_3 = arith.constant 0 : index
    %c0_4 = arith.constant 0 : index
    %5 = vector.load %arg3[%c0_3, %c0_4] : memref<64x1xf32, #tpu.memory_space<vmem>>, vector<64x1xf32>
    %6 = vector.broadcast %5 : vector<64x1xf32> to vector<64x128xf32>
    %7 = arith.addf %4, %6 : vector<64x128xf32>
    %cst = arith.constant 0.000000e+00 : f32
    %8 = vector.broadcast %cst : f32 to vector<64x128xf32>
    %9 = arith.maximumf %7, %8 : vector<64x128xf32>
    %c0_5 = arith.constant 0 : index
    %c0_6 = arith.constant 0 : index
    %10 = vector.load %arg4[%c0_5, %c0_6] : memref<64x64xf32, #tpu.memory_space<vmem>>, vector<64x64xf32>
    %cst_7 = arith.constant dense<0.000000e+00> : vector<64x128xf32>
    %11 = tpu.matmul %10, %9, %cst_7 {dimension_numbers = #tpu.dot_dimension_numbers<[1], [0], [0], [1], [0, 0, 1, 1], [], []>} : vector<64x64xf32>, vector<64x128xf32>, vector<64x128xf32> -> vector<64x128xf32>
    %c0_8 = arith.constant 0 : index
    %c0_9 = arith.constant 0 : index
    %12 = vector.load %arg5[%c0_8, %c0_9] : memref<64x1xf32, #tpu.memory_space<vmem>>, vector<64x1xf32>
    %13 = vector.broadcast %12 : vector<64x1xf32> to vector<64x128xf32>
    %14 = arith.addf %11, %13 : vector<64x128xf32>
    %cst_10 = arith.constant 0.000000e+00 : f32
    %15 = vector.broadcast %cst_10 : f32 to vector<64x128xf32>
    %16 = arith.maximumf %14, %15 : vector<64x128xf32>
    %c0_11 = arith.constant 0 : index
    %c0_12 = arith.constant 0 : index
    %17 = vector.load %arg6[%c0_11, %c0_12] : memref<64x1xf32, #tpu.memory_space<vmem>>, vector<64x1xf32>
    %18 = vector.broadcast %17 : vector<64x1xf32> to vector<64x128xf32>
    %19 = arith.mulf %18, %16 : vector<64x128xf32>
    %cst_13 = arith.constant dense<0.000000e+00> : vector<128xf32>
    %20 = vector.multi_reduction <add>, %19, %cst_13 [0] : vector<64x128xf32> to vector<128xf32>
    %21 = vector.shape_cast %20 : vector<128xf32> to vector<1x128xf32>
    %c0_14 = arith.constant 0 : index
    %22 = memref.load %arg7[%c0_14] : memref<1xf32, #tpu.memory_space<smem>>
    %23 = vector.broadcast %22 : f32 to vector<1x128xf32>
    %24 = arith.addf %21, %23 : vector<1x128xf32>
    %c0_15 = arith.constant 0 : index
    %c0_16 = arith.constant 0 : index
    %25 = vector.load %arg8[%c0_15, %c0_16] : memref<1x128xf32, #tpu.memory_space<vmem>>, vector<1x128xf32>
    tpu.vector_store %arg8[%c0_15, %c0_16], %24 {strides = array<i32>} : memref<1x128xf32, #tpu.memory_space<vmem>>, vector<1x128xf32>,
    return
  }
  func.func @transform_0(%arg0: i32) -> (i32, i32) {
    %c0_i32 = arith.constant 0 : i32
    %c0_i32_0 = arith.constant 0 : i32
    return %c0_i32, %arg0 : i32, i32
  }
  func.func @transform_1(%arg0: i32) -> (i32, i32) {
    %c0_i32 = arith.constant 0 : i32
    %c0_i32_0 = arith.constant 0 : i32
    %c0_i32_1 = arith.constant 0 : i32
    return %c0_i32, %c0_i32_0 : i32, i32
  }
  func.func @transform_2(%arg0: i32) -> (i32, i32) {
    %c0_i32 = arith.constant 0 : i32
    %c0_i32_0 = arith.constant 0 : i32
    %c0_i32_1 = arith.constant 0 : i32
    return %c0_i32, %c0_i32_0 : i32, i32
  }
  func.func @transform_3(%arg0: i32) -> (i32, i32) {
    %c0_i32 = arith.constant 0 : i32
    %c0_i32_0 = arith.constant 0 : i32
    %c0_i32_1 = arith.constant 0 : i32
    return %c0_i32, %c0_i32_0 : i32, i32
  }
  func.func @transform_4(%arg0: i32) -> (i32, i32) {
    %c0_i32 = arith.constant 0 : i32
    %c0_i32_0 = arith.constant 0 : i32
    %c0_i32_1 = arith.constant 0 : i32
    return %c0_i32, %c0_i32_0 : i32, i32
  }
  func.func @transform_5(%arg0: i32) -> (i32, i32) {
    %c0_i32 = arith.constant 0 : i32
    %c0_i32_0 = arith.constant 0 : i32
    %c0_i32_1 = arith.constant 0 : i32
    return %c0_i32, %c0_i32_0 : i32, i32
  }
  func.func @transform_6(%arg0: i32) -> i32 {
    %c0_i32 = arith.constant 0 : i32
    %c0_i32_0 = arith.constant 0 : i32
    return %c0_i32 : i32
  }
  func.func @transform_7(%arg0: i32) -> (i32, i32) {
    %c0_i32 = arith.constant 0 : i32
    %c0_i32_0 = arith.constant 0 : i32
    return %c0_i32, %arg0 : i32, i32
  }
}

</mosaic_0001>

<bundles_post_ra>
// kernel: tpu_custom_call.1
= control target key start
LH: loop header
LB: loop body
LE: loop exit
PB: predicated region body
PF: predicated region fallthrough
CT: control target
= control target key end

     0   :  { %v541_v2 = vmov 0   ;;  %s729_s0 = inlined_call_operand.vmem [shape: f32[1,128], index: 0, kind: input, shape index: {}]   ;;  %s730_s1 = inlined_call_operand.vmem [shape: f32[64,1], index: 1, kind: input, shape index: {}]   ;;  %s731_s2 = inlined_call_operand.vmem [shape: f32[64,1], index: 2, kind: input, shape index: {}]   ;;  %s732_s3 = inlined_call_operand.vmem [shape: f32[64,64], index: 3, kind: input, shape index: {}]   ;;  %s733_s4 = inlined_call_operand.vmem [shape: f32[64,1], index: 4, kind: input, shape index: {}]   ;;  %s734_s5 = inlined_call_operand.vmem [shape: f32[64,1], index: 5, kind: input, shape index: {}]   ;;  %s735_s6 = inlined_call_operand.<no memory space> [shape: f32[1], index: 6, kind: input, shape index: {}]   ;;  %s736_s7 = inlined_call_operand.hbm [shape: f32[1,128], index: 7, kind: output, shape index: {}]  }
   0x1   :  { %v91_v0 = vld [vmem:[%s731_s2] sm:$0xff]  ;;  %516 = vset.pattern.permute.xlu1 %v541_v2  ;;  %515 = vset.pattern.permute.xlu0 %v541_v2  ;;  %v92_v3 = vld [vmem:[%s731_s2 + $0x8] sm:$0xff]  ;;  %v32_v5 = vld [vmem:[%s730_s1 + $0x18] sm:$0xff] }
   0x2   :  { %v29_v1 = vld [vmem:[%s730_s1] sm:$0xff]  ;;  %101 = vperm.xlu1 %516, %v91_v0   ;;  %v30_v4 = vld [vmem:[%s730_s1 + $0x8] sm:$0xff]  ;;  %v31_v6 = vld [vmem:[%s730_s1 + $0x10] sm:$0xff] }
   0x3   :  { %39 = vperm.xlu0 %515, %v29_v1   ;;  %v94_v7 = vld [vmem:[%s731_s2 + $0x18] sm:$0xff]  ;;  %v93_v8 = vld [vmem:[%s731_s2 + $0x10] sm:$0xff] }
   0x6   :  { %106 = vperm.xlu1 %516, %v92_v3  }
   0x7   :  { %44 = vperm.xlu0 %515, %v30_v4  }
   0xa   :  { %54 = vperm.xlu1 %516, %v32_v5  }
   0xb   :  { %49 = vperm.xlu0 %515, %v31_v6  }
   0xc   :  { %13 = vsyncpa [#allocation4], 0  ;;  %v34_v9 = vld [vmem:[%s730_s1 + $0x28] sm:$0xff]  ;;  %v33_v10 = vld [vmem:[%s730_s1 + $0x20] sm:$0xff]  ;;  %vm211_vm0 = vcmask 523264   ;;  %s542_s8 = smov [#allocation3]  }
   0xd   :  { %v96_v11 = vld [vmem:[%s731_s2 + $0x28] sm:$0xff]  ;;  %v95_v12 = vld [vmem:[%s731_s2 + $0x20] sm:$0xff]  ;;  %v36_v13 = vld [vmem:[%s730_s1 + $0x38] sm:$0xff]  ;;  %s428_s9 = sshll.u32 %s542_s8, 4  ;;  %s429_s9 = int_to_ptr.vmem [resolvable:$true] %s428_s9 }
   0xe   :  { %116 = vperm.xlu1 %516, %v94_v7   ;;  %v35_v14 = vld [vmem:[%s730_s1 + $0x30] sm:$0xff]  ;;  %v98_v15 = vld [vmem:[%s731_s2 + $0x38] sm:$0xff]  ;;  %v164_v17 = vld [vmem:[%s733_s4 + $0x8] sm:$0xff]  ;;  %s517_s10 = scalar_lea.vmem %s429_s9, 16  ;;  %s521_s11 = scalar_lea.vmem %s429_s9, 32 }
   0xf   :  { %111 = vperm.xlu0 %515, %v93_v8   ;;  %v97_v16 = vld [vmem:[%s731_s2 + $0x30] sm:$0xff]  ;;  %v163_v18 = vld [vmem:[%s733_s4] sm:$0xff]  ;;  %v166_v19 = vld [vmem:[%s733_s4 + $0x18] sm:$0xff]  ;;  %p518_p0 = scmp.ne.s32.totalorder %s429_s9, %s517_s10  ;;  %p522_p1 = scmp.lt.s32.totalorder %s429_s9, %s429_s9 }
  0x10   :  { %v165_v20 = vld [vmem:[%s733_s4 + $0x10] sm:$0xff]  ;;  %v155_v21 = vld [vmem:[%s732_s3] sm:$0xff]  ;;  %v350_v23 = vld [vmem:[%s734_s5 + $0x8] sm:$0xff]  ;;  %p523_p2 = scmp.lt.s32.totalorder %s521_s11, %s517_s10 }
  0x11   :  { %v159_v22 = vld [vmem:[%s732_s3 + $0x20] sm:$0xff]  ;;  %477 = vmatprep.mubr.msk.f32.mxu0 %vm211_vm0, %v155_v21  ;;  %v351_v25 = vld [vmem:[%s734_s5 + $0x10] sm:$0xff]  ;;  %v352_v27 = vld [vmem:[%s734_s5 + $0x18] sm:$0xff] }
  0x12   :  { %64 = vperm.xlu1 %516, %v34_v9   ;;  %v349_v24 = vld [vmem:[%s734_s5] sm:$0xff]  ;;  %483 = vmatprep.mubr.msk.f32.mxu1 %vm211_vm0, %v159_v22  ;;  %v168_v28 = vld [vmem:[%s733_s4 + $0x28] sm:$0xff]  ;;  %v169_v30 = vld [vmem:[%s733_s4 + $0x30] sm:$0xff]  ;;  %p524_p3 = por %p523_p2, %p522_p1 }
  0x13   :  { %59 = vperm.xlu0 %515, %v33_v10   ;;  %v167_v26 = vld [vmem:[%s733_s4 + $0x20] sm:$0xff]  ;;  %v354_v31 = vld [vmem:[%s734_s5 + $0x28] sm:$0xff]  ;;  %v170_v32 = vld [vmem:[%s733_s4 + $0x38] sm:$0xff] }
  0x14   :  { %v353_v29 = vld [vmem:[%s734_s5 + $0x20] sm:$0xff]  ;;  %v356_v33 = vld [vmem:[%s734_s5 + $0x38] sm:$0xff]  ;;  %v355_v34 = vld [vmem:[%s734_s5 + $0x30] sm:$0xff]  ;;  %p525_p4 = pnand %p524_p3, %p518_p0 }
  0x15   :  { %v436_v35 = vld [vmem:[%s729_s0] ss:$0 sm:$0xff]  ;;  %v162_v21 = vld [vmem:[%s732_s3 + $0x38] sm:$0xff] }
  0x16   :  { %126 = vperm.xlu1 %516, %v96_v11  }
  0x17   :  { %121 = vperm.xlu0 %515, %v95_v12  }
  0x1a   :  { %74 = vperm.xlu1 %516, %v36_v13  }
  0x1b   :  { %69 = vperm.xlu0 %515, %v35_v14  }
  0x1e   :  { %136 = vperm.xlu1 %516, %v98_v15  }
  0x1f   :  { %131 = vperm.xlu0 %515, %v97_v16   ;;  %v156_v16 = vld [vmem:[%s732_s3 + $0x8] sm:$0xff] }
  0x22   :  { %178 = vperm.xlu1 %516, %v164_v17   ;;  %v160_v17 = vld [vmem:[%s732_s3 + $0x28] sm:$0xff] }
  0x23   :  { %173 = vperm.xlu0 %515, %v163_v18   ;;  %v157_v18 = vld [vmem:[%s732_s3 + $0x10] sm:$0xff] }
  0x26   :  { %188 = vperm.xlu1 %516, %v166_v19   ;;  %v161_v19 = vld [vmem:[%s732_s3 + $0x30] sm:$0xff] }
  0x27   :  { %183 = vperm.xlu0 %515, %v165_v20   ;;  %v158_v20 = vld [vmem:[%s732_s3 + $0x18] sm:$0xff] }
  0x2a   :  { %364 = vperm.xlu1 %516, %v350_v23  }
  0x2b   :  { %359 = vperm.xlu0 %515, %v349_v24  }
  0x2e   :  { %369 = vperm.xlu1 %516, %v351_v25  }
  0x2f   :  { %193 = vperm.xlu0 %515, %v167_v26  }
  0x32   :  { %374 = vperm.xlu1 %516, %v352_v27  }
  0x33   :  { %198 = vperm.xlu0 %515, %v168_v28  }
  0x36   :  { %379 = vperm.xlu1 %516, %v353_v29  }
  0x37   :  { %203 = vperm.xlu0 %515, %v169_v30  }
  0x3a   :  { %384 = vperm.xlu1 %516, %v354_v31  }
  0x3b   :  { %208 = vperm.xlu0 %515, %v170_v32  }
  0x3e   :  { %394 = vperm.xlu1 %516, %v356_v33  }
  0x3f   :  { %389 = vperm.xlu0 %515, %v355_v34  }
  0x81   :  { %v102_v36 = vpop.permute.xlu1 %101 }
  0x82   :  { %v40_v37 = vpop.permute.xlu0 %39 }
  0x83   :  { %v83_v38 = vmul.f32 %v436_v35, %v40_v37 }
  0x85   :  { %v107_v39 = vpop.permute.xlu1 %106  ;;  %v139_v41 = vadd.f32 %v102_v36, %v83_v38 }
  0x86   :  { %v45_v40 = vpop.permute.xlu0 %44 }
  0x87   :  { %v84_v42 = vmul.f32 %v436_v35, %v45_v40  ;;  %v147_v46 = vmax.f32 %v139_v41, 0.0 }
  0x89   :  { %v140_v43 = vadd.f32 %v107_v39, %v84_v42  ;;  %v55_v44 = vpop.permute.xlu1 %54 }
  0x8a   :  { %v50_v45 = vpop.permute.xlu0 %49  ;;  %v86_v49 = vmul.f32 %v436_v35, %v55_v44 }
  0x8b   :  { %v148_v47 = vmax.f32 %v140_v43, 0.0  ;;  %v85_v50 = vmul.f32 %v436_v35, %v50_v45 }
  0x8d   :  { %v489_v48 = vpack.c.bf16 %v148_v47, %v147_v46  ;;  %v117_v51 = vpop.permute.xlu1 %116 }
  0x8e   :  { %v112_v52 = vpop.permute.xlu0 %111  ;;  %v142_v53 = vadd.f32 %v117_v51, %v86_v49 }
  0x8f   :  { %v141_v54 = vadd.f32 %v112_v52, %v85_v50  ;;  %490 = vmatprep.subr.bf16.mxu0 %v489_v48  ;;  %505 = vmatprep.subr.bf16.mxu1 %v489_v48 }
  0x90   :  { %492 = vmatpush3.bf16.msra.mxu0 %v489_v48  ;;  %509 = vmatpush3.bf16.msra.mxu1 %v489_v48  ;;  %v150_v55 = vmax.f32 %v142_v53, 0.0 }
  0x91   :  { %v149_v56 = vmax.f32 %v141_v54, 0.0  ;;  %v65_v57 = vpop.permute.xlu1 %64 }
  0x92   :  { %v60_v58 = vpop.permute.xlu0 %59  ;;  %v88_v60 = vmul.f32 %v436_v35, %v65_v57 }
  0x93   :  { %v493_v59 = vpack.c.bf16 %v150_v55, %v149_v56  ;;  %v87_v61 = vmul.f32 %v436_v35, %v60_v58 }
  0x95   :  { %494 = vmatprep.subr.bf16.mxu0 %v493_v59  ;;  %506 = vmatprep.subr.bf16.mxu1 %v493_v59  ;;  %v127_v62 = vpop.permute.xlu1 %126 }
  0x96   :  { %v122_v63 = vpop.permute.xlu0 %121  ;;  %496 = vmatpush3.bf16.msra.mxu0 %v493_v59  ;;  %510 = vmatpush3.bf16.msra.mxu1 %v493_v59  ;;  %v144_v0 = vadd.f32 %v127_v62, %v88_v60 }
  0x97   :  { %v143_v1 = vadd.f32 %v122_v63, %v87_v61 }
  0x98   :  { %v152_v2 = vmax.f32 %v144_v0, 0.0 }
  0x99   :  { %v151_v3 = vmax.f32 %v143_v1, 0.0  ;;  %v75_v4 = vpop.permute.xlu1 %74 }
  0x9a   :  { %v70_v5 = vpop.permute.xlu0 %69  ;;  %v90_v7 = vmul.f32 %v436_v35, %v75_v4 }
  0x9b   :  { %v497_v6 = vpack.c.bf16 %v152_v2, %v151_v3  ;;  %v89_v8 = vmul.f32 %v436_v35, %v70_v5 }
  0x9d   :  { %498 = vmatprep.subr.bf16.mxu0 %v497_v6  ;;  %507 = vmatprep.subr.bf16.mxu1 %v497_v6  ;;  %v137_v9 = vpop.permute.xlu1 %136 }
  0x9e   :  { %v132_v10 = vpop.permute.xlu0 %131  ;;  %500 = vmatpush3.bf16.msra.mxu0 %v497_v6  ;;  %511 = vmatpush3.bf16.msra.mxu1 %v497_v6  ;;  %v146_v11 = vadd.f32 %v137_v9, %v90_v7 }
  0x9f   :  { %v145_v12 = vadd.f32 %v132_v10, %v89_v8 }
  0xa0   :  { %v154_v13 = vmax.f32 %v146_v11, 0.0 }
  0xa1   :  { %v153_v14 = vmax.f32 %v145_v12, 0.0  ;;  %v179_v23 = vpop.permute.xlu1 %178 }
  0xa2   :  { %v174_v22 = vpop.permute.xlu0 %173 }
  0xa3   :  { %v501_v15 = vpack.c.bf16 %v154_v13, %v153_v14 }
  0xa5   :  { %502 = vmatprep.subr.bf16.mxu0 %v501_v15  ;;  %508 = vmatprep.subr.bf16.mxu1 %v501_v15  ;;  %v189_v25 = vpop.permute.xlu1 %188 }
  0xa6   :  { %504 = vmatpush3.bf16.msra.mxu0 %v501_v15  ;;  %512 = vmatpush3.bf16.msra.mxu1 %v501_v15  ;;  %v184_v24 = vpop.permute.xlu0 %183 }
  0xa9   :  { %478 = vmatmul.mubr.msk.f32.vlgmr.msra.gmra.mrb[0].mxu0 %vm211_vm0, %v156_v16  ;;  %484 = vmatmul.mubr.msk.f32.vlgmr.msra.gmra.mrb[0].mxu1 %vm211_vm0, %v160_v17  ;;  %v365_v27 = vpop.permute.xlu1 %364 }
  0xaa   :  { %480 = vmatprep.mubr.msk.f32.mxu0 %vm211_vm0, %v157_v18  ;;  %486 = vmatprep.mubr.msk.f32.mxu1 %vm211_vm0, %v161_v19  ;;  %v360_v26 = vpop.permute.xlu0 %359  ;;  %v419_v18 = vstv %s735_s6 }
  0xad   :  { %481 = vmatmul.mubr.msk.f32.gmra.mrb[2].mxu0 %vm211_vm0, %v158_v20  ;;  %487 = vmatmul.mubr.msk.f32.gmra.mrb[2].mxu1 %vm211_vm0, %v162_v21  ;;  %v370_v29 = vpop.permute.xlu1 %369 }
  0xae   :  { %v194_v28 = vpop.permute.xlu0 %193 }
  0xb1   :  { %v375_v31 = vpop.permute.xlu1 %374 }
  0xb2   :  { %v199_v30 = vpop.permute.xlu0 %198 }
  0xb5   :  { %v380_v50 = vpop.permute.xlu1 %379 }
  0xb6   :  { %v204_v38 = vpop.permute.xlu0 %203 }
  0xb9   :  { %v385_v63 = vpop.permute.xlu1 %384 }
  0xba   :  { %v209_v58 = vpop.permute.xlu0 %208 }
  0xbd   :  { %v395_v9 = vpop.permute.xlu1 %394 }
  0xbe   :  { %v390_v6 = vpop.permute.xlu0 %389 }
 0x17c   :  { %v479_v32 = vpop.f32.mrb[0].mxu0  ;;  %v485_v33 = vpop.f32.mrb[0].mxu1 }
 0x17d   :  { %v308_v34 = vadd.f32 %v479_v32, %v179_v23  ;;  %v302_v35 = vpop.f32.mrb[1].mxu0  ;;  %v322_v36 = vpop.f32.mrb[1].mxu1  ;;  %v328_v51 = vadd.f32 %v485_v33, %v199_v30 }
 0x17e   :  { %v303_v37 = vadd.f32 %v302_v35, %v174_v22  ;;  %v323_v48 = vadd.f32 %v322_v36, %v194_v28 }
 0x17f   :  { %v342_v39 = vmax.f32 %v308_v34, 0.0  ;;  %v346_v59 = vmax.f32 %v328_v51, 0.0 }
 0x180   :  { %v341_v40 = vmax.f32 %v303_v37, 0.0  ;;  %v482_v41 = vpop.f32.mrb[2].mxu0  ;;  %v488_v42 = vpop.f32.mrb[2].mxu1  ;;  %v345_v55 = vmax.f32 %v323_v48, 0.0 }
 0x181   :  { %v398_v43 = vmul.f32 %v365_v27, %v342_v39  ;;  %v318_v44 = vadd.f32 %v482_v41, %v189_v25  ;;  %v312_v45 = vpop.f32.mrb[3].mxu0  ;;  %v332_v46 = vpop.f32.mrb[3].mxu1  ;;  %v338_v61 = vadd.f32 %v488_v42, %v209_v58  ;;  %v402_v3 = vmul.f32 %v385_v63, %v346_v59 }
 0x182   :  { %v397_v47 = vmul.f32 %v360_v26, %v341_v40  ;;  %v313_v49 = vadd.f32 %v312_v45, %v184_v24  ;;  %v333_v57 = vadd.f32 %v332_v46, %v204_v38  ;;  %v401_v0 = vmul.f32 %v380_v50, %v345_v55 }
 0x183   :  { %v344_v53 = vmax.f32 %v318_v44, 0.0  ;;  %v348_v4 = vmax.f32 %v338_v61, 0.0 }
 0x184   :  { %v405_v52 = vadd.f32 %v398_v43, %v397_v47  ;;  %v343_v54 = vmax.f32 %v313_v49, 0.0  ;;  %v347_v2 = vmax.f32 %v333_v57, 0.0 }
 0x185   :  { %v400_v60 = vmul.f32 %v375_v31, %v344_v53  ;;  %v404_v10 = vmul.f32 %v395_v9, %v348_v4 }
 0x186   :  { %v399_v56 = vmul.f32 %v370_v29, %v343_v54  ;;  %v403_v7 = vmul.f32 %v390_v6, %v347_v2 }
 0x188   :  { %v406_v62 = vadd.f32 %v405_v52, %v399_v56 }
 0x18a   :  { %v407_v1 = vadd.f32 %v406_v62, %v400_v60 }
 0x18c   :  { %v408_v5 = vadd.f32 %v407_v1, %v401_v0 }
 0x18e   :  { %v409_v8 = vadd.f32 %v408_v5, %v402_v3 }
 0x190   :  { %v410_v11 = vadd.f32 %v409_v8, %v403_v7 }
 0x192   :  { %v411_v12 = vadd.f32 %v410_v11, %v404_v10 }
 0x194   :  { %v412_v13 = vrot.slane %v411_v12, 4 }
 0x196   :  { %v413_v14 = vadd.f32 %v412_v13, %v411_v12 }
 0x198   :  { %v414_v15 = vrot.slane %v413_v14, 2 }
 0x19a   :  { %v415_v16 = vadd.f32 %v414_v15, %v413_v14 }
 0x19c   :  { %v416_v17 = vrot.slane %v415_v16, 1 }
 0x19e   :  { %v417_v19 = vadd.f32 %v416_v17, %v415_v16 }
 0x1a0   :  { %v420_v20 = vadd.f32 %v419_v18, %v417_v19 }
 0x1a2   :  { %421 = vst [vmem:[#allocation3] sm:$0x1] %v420_v20 }
 0x1a3   :  { %528 = shalt.err (!%p525_p4)
}
 0x1a4   :  { %s529_s1 = scalar_lea.hbm %s736_s7, 16 }
 0x1a5   :  { %p530_p5 = scmp.ne.s32.totalorder %s736_s7, %s529_s1  ;;  %p533_p6 = scmp.lt.u32.totalorder %s529_s1, %s736_s7 }
 0x1a7   :  { %p535_p7 = pnand %p533_p6, %p530_p5 }
 0x1a9   :  { %538 = shalt.err (!%p535_p7)
}
 0x1aa   :  { %431 = dma.vmem_to_hbm [thread:$0]  %s429_s9, 16, %s736_s7, [#allocation4]  }
 0x1ab   :  { %539 = dma.done.wait [#allocation4], 16  }
 0x1ac   :  { %540 = vsyncadd [#allocation4], 4294967280 }
 0x1ad   :  { %435 = vsyncpa [#allocation4], 1 }

</bundles_post_ra>
